<compile_context>
chip_gen: v7x
topology: tpu7x:2x2x1
jax: 0.10.0
libtpu: 0.0.40
codegen_flags: <defaults>
</compile_context>

<pallas_src>
import functools
import math

import jax
import jax.numpy as jnp
from jax.experimental import pallas as pl
from jax.experimental.pallas import tpu as pltpu


def _round_up(x, m):
    return ((x + m - 1) // m) * m


def _cdiv(a, b):
    return -(-a // b)


def _diffusion_embedding_kernel(noise_ref, w_ref, out_ref, *,
                                half, n_channels, out_channels, r1_pad, r2_pad):
    """One batch tile of the DiffusionEmbedding forward.

    w_ref packs, row-wise (every offset a multiple of 8 sublanes):
      rows [0, r1_pad)               : W1 (n_channels real rows, rest zero)
      rows [r1_pad, r1_pad + r2_pad) : W2 (out_channels real rows, rest zero)
      rows [r1_pad + r2_pad, +8)     : aux block: b1 / b2 / freqs (rest zero)
    """
    aux0 = r1_pad + r2_pad
    aux = w_ref[aux0:aux0 + 8, :]                      # one aligned (8, W) read
    b1 = aux[0:1, :]                                   # (1, W)
    b2 = aux[1:2, :]                                   # (1, W)
    freqs = aux[2:3, 0:half]                           # (1, half)

    # Sinusoidal embedding; noise already carries linear_scale (host-folded,
    # same rounding order as the PyTorch reference).
    noise = noise_ref[...]                             # (TB, 1)
    arg = noise * freqs                                # (TB, half)
    emb = jnp.concatenate([jnp.sin(arg), jnp.cos(arg)], axis=-1)  # (TB, n_channels)
    if r1_pad != n_channels:                           # static; zero K-padding
        emb = jnp.concatenate(
            [emb, jnp.zeros((emb.shape[0], r1_pad - n_channels), emb.dtype)],
            axis=-1)

    # projection1 + SiLU: single K-matmul (zero-padded W1 rows contribute 0).
    w1 = w_ref[0:r1_pad, :]
    h = jnp.dot(emb, w1, preferred_element_type=jnp.float32) + b1
    h = h * jax.nn.sigmoid(h)

    # projection2 + SiLU.
    if r2_pad != out_channels:                         # static; zero K-padding
        hk = jnp.concatenate(
            [h, jnp.zeros((h.shape[0], r2_pad - out_channels), h.dtype)],
            axis=-1)
    else:
        hk = h
    w2 = w_ref[r1_pad:r1_pad + r2_pad, :]
    h = jnp.dot(hk, w2, preferred_element_type=jnp.float32) + b2
    h = h * jax.nn.sigmoid(h)

    out_ref[...] = h.astype(out_ref.dtype)             # (TB, out_channels)


def diffusion_embedding(noise_level, params, *, n_channels, out_channels,
                        linear_scale, block_b=1024):
    """noise_level: (B,) or (B,1) float -> (B, out_channels) float32."""
    if noise_level.ndim > 1:
        noise_level = noise_level.reshape(noise_level.shape[0])
    B = int(noise_level.shape[0])
    half = n_channels // 2
    assert half >= 2, "pos_emb_channels must be >= 4 (freqs exponent needs half-1 > 0)"

    # Sublane-aligned row offsets inside the packed parameter slab.
    r1_pad = _round_up(n_channels, 8)
    r2_pad = _round_up(out_channels, 8)
    slab_rows = r1_pad + r2_pad + 8
    W = out_channels                                    # lane width of slab & output
    assert half <= W, "frequency table must fit in the slab width"

    # Batch tiling: multiple-of-8 tiles capped at block_b; when the batch
    # allows it, force >= 2 grid steps so the "parallel" batch axis can be
    # split across the two v7x TensorCores.
    block_b = max(8, _round_up(block_b, 8))
    B8 = _round_up(max(B, 1), 8)
    if B8 <= 8:
        TB = 8
    else:
        n_tiles = max(2, _cdiv(B8, block_b))
        TB = min(block_b, _round_up(_cdiv(B8, n_tiles), 8))
    grid_b = _cdiv(B8, TB)
    Bp = grid_b * TB

    # Fold linear_scale into the noise on the host (reference rounding order:
    # (scale * noise) * freqs), then zero-pad the batch to Bp rows.
    noise = (linear_scale * noise_level.astype(jnp.float32)).reshape(B, 1)
    if Bp != B:
        noise = jnp.concatenate([noise, jnp.zeros((Bp - B, 1), jnp.float32)], 0)

    # Host-side frequency table (identical to the reference's).
    exponent = math.log(10000.0) / (half - 1)
    freqs = jnp.exp(jnp.arange(half, dtype=jnp.float32) * -exponent)

    # Single packed parameter slab: one resident VMEM block, one DMA stream.
    w1 = params["w1"].astype(jnp.float32)               # (n_channels, out_channels)
    w2 = params["w2"].astype(jnp.float32)               # (out_channels, out_channels)
    b1 = params["b1"].reshape(-1).astype(jnp.float32)   # (out_channels,)
    b2 = params["b2"].reshape(-1).astype(jnp.float32)   # (out_channels,)

    slab = jnp.zeros((slab_rows, W), jnp.float32)
    slab = slab.at[0:n_channels, :].set(w1)
    slab = slab.at[r1_pad:r1_pad + out_channels, :].set(w2)
    aux0 = r1_pad + r2_pad
    slab = slab.at[aux0 + 0, :].set(b1)
    slab = slab.at[aux0 + 1, :].set(b2)
    slab = slab.at[aux0 + 2, 0:half].set(freqs)

    kernel = functools.partial(
        _diffusion_embedding_kernel, half=half, n_channels=n_channels,
        out_channels=out_channels, r1_pad=r1_pad, r2_pad=r2_pad)

    # Advisory cost hint for XLA's scheduler.
    flops = 2 * Bp * (r1_pad * W + r2_pad * W)
    transcendentals = Bp * (2 * half + 2 * W)            # sin + cos + 2 sigmoids
    bytes_accessed = 4 * (noise.size + slab.size + Bp * W)

    out = pl.pallas_call(
        kernel,
        out_shape=jax.ShapeDtypeStruct((Bp, W), jnp.float32),
        grid=(grid_b,),
        in_specs=[
            pl.BlockSpec((TB, 1), lambda i: (i, 0)),           # noise tile
            pl.BlockSpec((slab_rows, W), lambda i: (0, 0)),    # resident params
        ],
        out_specs=pl.BlockSpec((TB, W), lambda i: (i, 0)),
        compiler_params=pltpu.CompilerParams(
            dimension_semantics=("parallel",)),                # v7x: split batch over 2 TCs
        cost_estimate=pl.CostEstimate(
            flops=flops,
            transcendentals=transcendentals,
            bytes_accessed=bytes_accessed),
    )(noise, slab)

    # Output last dim is exactly out_channels -> no column-slice copy, no
    # padded writeback.  Only slice rows when the batch was zero-padded.
    return out if Bp == B else out[:B]


def _reference(noise_level, params, *, n_channels, linear_scale):
    # Pure-JAX reference mirroring the PyTorch forward.
    if noise_level.ndim > 1:
        noise_level = noise_level.squeeze(-1)
    half_dim = n_channels // 2
    exponent = math.log(10000.0) / (half_dim - 1)
    freqs = jnp.exp(jnp.arange(half_dim, dtype=jnp.float32) * -exponent)
    emb = linear_scale * noise_level[:, None] * freqs[None, :]
    emb = jnp.concatenate([jnp.sin(emb), jnp.cos(emb)], axis=-1)
    h = emb @ params["w1"] + params["b1"]
    h = h * jax.nn.sigmoid(h)
    h = h @ params["w2"] + params["b2"]
    h = h * jax.nn.sigmoid(h)
    return h


if __name__ == "__main__":
    # Hyperparameters implied by the module:
    #   hparams.dpm.pos_emb_channels  -> n_channels
    #   hparams.dpm.pos_emb_scale     -> linear_scale
    #   hparams.arch.pos_emb_dim      -> out_channels
    n_channels = 32
    out_channels = 64
    linear_scale = 1000.0
    batch = 8

    key = jax.random.PRNGKey(0)
    k_n, k_w1, k_b1, k_w2, k_b2 = jax.random.split(key, 5)

    noise_level = jax.random.uniform(k_n, (batch, 1), dtype=jnp.float32)

    # Deterministic parameter init (PyTorch Linear default-ish).
    lim1 = 1.0 / math.sqrt(n_channels)
    lim2 = 1.0 / math.sqrt(out_channels)
    params = {
        "w1": jax.random.uniform(k_w1, (n_channels, out_channels), jnp.float32, -lim1, lim1),
        "b1": jax.random.uniform(k_b1, (1, out_channels), jnp.float32, -lim1, lim1),
        "w2": jax.random.uniform(k_w2, (out_channels, out_channels), jnp.float32, -lim2, lim2),
        "b2": jax.random.uniform(k_b2, (1, out_channels), jnp.float32, -lim2, lim2),
    }

    out = diffusion_embedding(noise_level, params,
                              n_channels=n_channels,
                              out_channels=out_channels,
                              linear_scale=linear_scale)
    out = jax.block_until_ready(out)

    ref = _reference(noise_level, params, n_channels=n_channels, linear_scale=linear_scale)
    assert out.shape == (batch, out_channels)
    assert jnp.allclose(out, ref, atol=1e-5, rtol=1e-5), "mismatch vs reference"

    print("KERNEL_OK")
</pallas_src>

<mosaic_0001>
module attributes {stable_mosaic.version = 11 : i64} {
  func.func @_diffusion_embedding_kernel(%arg0: i32, %arg1: memref<8x1xf32, #tpu.memory_space<vmem>>, %arg2: memref<104x64xf32, #tpu.memory_space<vmem>>, %arg3: memref<8x64xf32, #tpu.memory_space<vmem>>) attributes {dimension_semantics = [#tpu.dimension_semantics<parallel>], iteration_bounds = array<i64: 1>, scalar_prefetch = 0 : i64, scratch_operands = 0 : i64, tpu.core_type = #tpu.core_type<tc>, window_params = [{transform_indices = @transform_0, window_bounds = array<i64: 8, 1>}, {pipeline_mode = #tpu.pipeline_mode<synchronous>, transform_indices = @transform_1, window_bounds = array<i64: 104, 64>}, {transform_indices = @transform_2, window_bounds = array<i64: 8, 64>}]} {
    %c96 = arith.constant 96 : index
    %c0 = arith.constant 0 : index
    %0 = vector.load %arg2[%c96, %c0] : memref<104x64xf32, #tpu.memory_space<vmem>>, vector<8x64xf32>
    %1 = vector.extract_strided_slice %0 {offsets = [0, 0], sizes = [1, 64], strides = [1, 1]} : vector<8x64xf32> to vector<1x64xf32>
    %2 = vector.extract_strided_slice %0 {offsets = [1, 0], sizes = [1, 64], strides = [1, 1]} : vector<8x64xf32> to vector<1x64xf32>
    %3 = vector.extract_strided_slice %0 {offsets = [2, 0], sizes = [1, 16], strides = [1, 1]} : vector<8x64xf32> to vector<1x16xf32>
    %c0_0 = arith.constant 0 : index
    %c0_1 = arith.constant 0 : index
    %4 = vector.load %arg1[%c0_0, %c0_1] : memref<8x1xf32, #tpu.memory_space<vmem>>, vector<8x1xf32>
    %5 = vector.broadcast %4 : vector<8x1xf32> to vector<8x16xf32>
    %6 = vector.broadcast %3 : vector<1x16xf32> to vector<8x16xf32>
    %7 = arith.mulf %5, %6 : vector<8x16xf32>
    %8 = math.sin %7 : vector<8x16xf32>
    %9 = math.cos %7 : vector<8x16xf32>
    %10 = tpu.concatenate %8, %9 in 1 : vector<8x16xf32>, vector<8x16xf32> -> vector<8x32xf32>
    %c0_2 = arith.constant 0 : index
    %c0_3 = arith.constant 0 : index
    %11 = vector.load %arg2[%c0_2, %c0_3] : memref<104x64xf32, #tpu.memory_space<vmem>>, vector<32x64xf32>
    %cst = arith.constant dense<0.000000e+00> : vector<8x64xf32>
    %12 = tpu.matmul %10, %11, %cst {dimension_numbers = #tpu.dot_dimension_numbers<[1], [0], [0], [1], [0, 0, 1, 1], [], []>} : vector<8x32xf32>, vector<32x64xf32>, vector<8x64xf32> -> vector<8x64xf32>
    %13 = vector.broadcast %1 : vector<1x64xf32> to vector<8x64xf32>
    %14 = arith.addf %12, %13 : vector<8x64xf32>
    %15 = arith.negf %14 : vector<8x64xf32>
    %16 = math.exp %15 : vector<8x64xf32>
    %cst_4 = arith.constant 1.000000e+00 : f32
    %17 = vector.broadcast %cst_4 : f32 to vector<8x64xf32>
    %18 = arith.addf %17, %16 : vector<8x64xf32>
    %19 = arith.divf %17, %18 : vector<8x64xf32>
    %20 = arith.mulf %14, %19 : vector<8x64xf32>
    %c32 = arith.constant 32 : index
    %c0_5 = arith.constant 0 : index
    %21 = vector.load %arg2[%c32, %c0_5] : memref<104x64xf32, #tpu.memory_space<vmem>>, vector<64x64xf32>
    %cst_6 = arith.constant dense<0.000000e+00> : vector<8x64xf32>
    %22 = tpu.matmul %20, %21, %cst_6 {dimension_numbers = #tpu.dot_dimension_numbers<[1], [0], [0], [1], [0, 0, 1, 1], [], []>} : vector<8x64xf32>, vector<64x64xf32>, vector<8x64xf32> -> vector<8x64xf32>
    %23 = vector.broadcast %2 : vector<1x64xf32> to vector<8x64xf32>
    %24 = arith.addf %22, %23 : vector<8x64xf32>
    %25 = arith.negf %24 : vector<8x64xf32>
    %26 = math.exp %25 : vector<8x64xf32>
    %cst_7 = arith.constant 1.000000e+00 : f32
    %27 = vector.broadcast %cst_7 : f32 to vector<8x64xf32>
    %28 = arith.addf %27, %26 : vector<8x64xf32>
    %29 = arith.divf %27, %28 : vector<8x64xf32>
    %30 = arith.mulf %24, %29 : vector<8x64xf32>
    %c0_8 = arith.constant 0 : index
    %c0_9 = arith.constant 0 : index
    %31 = vector.load %arg3[%c0_8, %c0_9] : memref<8x64xf32, #tpu.memory_space<vmem>>, vector<8x64xf32>
    tpu.vector_store %arg3[%c0_8, %c0_9], %30 {strides = array<i32>} : memref<8x64xf32, #tpu.memory_space<vmem>>, vector<8x64xf32>,
    return
  }
  func.func @transform_0(%arg0: i32) -> (i32, i32) {
    %c0_i32 = arith.constant 0 : i32
    %c0_i32_0 = arith.constant 0 : i32
    return %arg0, %c0_i32 : i32, i32
  }
  func.func @transform_1(%arg0: i32) -> (i32, i32) {
    %c0_i32 = arith.constant 0 : i32
    %c0_i32_0 = arith.constant 0 : i32
    %c0_i32_1 = arith.constant 0 : i32
    return %c0_i32, %c0_i32_0 : i32, i32
  }
  func.func @transform_2(%arg0: i32) -> (i32, i32) {
    %c0_i32 = arith.constant 0 : i32
    %c0_i32_0 = arith.constant 0 : i32
    return %arg0, %c0_i32 : i32, i32
  }
}

</mosaic_0001>

<bundles_post_ra>
// kernel: tpu_custom_call.1
= control target key start
LH: loop header
LB: loop body
LE: loop exit
PB: predicated region body
PF: predicated region fallthrough
CT: control target
= control target key end

     0   :  { %v561_v1 = vmov 0   ;;  %s681_s0 = inlined_call_operand.vmem [shape: f32[8,1], index: 0, kind: input, shape index: {}]   ;;  %s682_s1 = inlined_call_operand.vmem [shape: f32[104,64], index: 1, kind: input, shape index: {}]   ;;  %s683_s2 = inlined_call_operand.hbm [shape: f32[8,64], index: 2, kind: output, shape index: {}]  }
   0x1   :  { %v13_v0 = vld [vmem:[%s681_s0] sm:$0xff]  ;;  %524 = vset.pattern.permute.xlu0 %v561_v1 }
   0x2   :  { %16 = vperm.xlu0 %524, %v13_v0  }
   0x3   :  { %7 = vsyncpa [#allocation3], 0  ;;  %v237_v2 = vld [vmem:[%s682_s1] sm:$0xff]  ;;  %v238_v3 = vld [vmem:[%s682_s1 + $0x8] sm:$0xff]  ;;  %v562_v5 = vmov 0.0|0.0   ;;  %v19_v9 = vlaneseq  ;;  %vm569_vm9 = vmmov 0  }
   0x4   :  { %v239_v4 = vld [vmem:[%s682_s1 + $0x10] sm:$0xff]  ;;  %490 = vmatprep.subr.bf16.mxu0 %v562_v5  ;;  %v491_v6 = vpack.c.bf16 %v238_v3, %v237_v2  ;;  %v240_v7 = vld [vmem:[%s682_s1 + $0x18] sm:$0xff]  ;;  %496 = vmatprep.subr.bf16.mxu1 %v562_v5  ;;  %v612_v12 = vld [vmem:[%s682_s1 + $0x60] sm:$0xff]  ;;  %v563_v26 = vmov 683565275   ;;  %s571_s20 = smov 16  }
   0x5   :  { %v494_v8 = vpack.c.bf16 %v240_v7, %v239_v4  ;;  %v606_v10 = vshrl.u32 %v19_v9, 7  ;;  %v564_v28 = vmov 2475754826   ;;  %v565_v31 = vmov 2131351028  }
   0x6   :  { %492 = vmatpush3.bf16.msra.mxu0 %v491_v6  ;;  %v566_v34 = vmov 2102212464   ;;  %v567_v37 = vmov 920167782   ;;  %v568_v40 = vmov 1326507024  }
   0x7   :  { %493 = vmatprep.subr.bf16.mxu0 %v562_v5  ;;  %v21_v11 = vsub.s32 2, %v606_v10 }
   0x9   :  { %v22_v13 = vrot.slane %v612_v12, %v21_v11 }
   0xa   :  { %495 = vmatpush3.bf16.msra.mxu0 %v494_v8 }
  0x81   :  { %v17_v14 = vpop.permute.xlu0 %16 }
  0x82   :  { %v615_v15 = vmul.f32 %v22_v13, %v17_v14 }
  0x84   :  { %v27_v16 = vand.u32 2139095040, %v615_v15  ;;  %v24_v20 = vand.u32 2147483647, %v615_v15  ;;  %vm26_vm7 = vcmp.lt.s32.totalorder %v615_v15, 0 }
  0x86   :  { %v28_v17 = vshrl.u32 %v27_v16, 23  ;;  %v31_v23 = vand.u32 8388607, %v24_v20  ;;  %vm25_vm8 = vcmp.le.f32.partialorder %v24_v20, 0.7853982 }
  0x88   :  { %v434_v18 = vadd.s32 4294967169, %v28_v17  ;;  %v32_v42 = vor.u32 8388608, %v31_v23 }
  0x8a   :  { %v34_v19 = vadd.s32 1, %v434_v18  ;;  %v72_v56 = vshll.u32 %v32_v42, 8 }
  0x8c   :  { %vm35_vm0 = vcmp.gt.s32.totalorder %v34_v19, 0 }
  0x8d   :  { %v36_v21 = vsel %vm35_vm0, %v34_v19, 0  ;;  %vm116_vm0 = vweird.f32 %v615_v15 }
  0x8e   :  { %v38_v22 = vand.u32 31, %v36_v21  ;;  %v37_v25 = vshrl.u32 %v36_v21, 5 }
  0x90   :  { %v39_v24 = vsub.s32 32, %v38_v22  ;;  %v41_v27 = vshll.u32 %v563_v26, %v38_v22  ;;  %v44_v29 = vshll.u32 %v564_v28, %v38_v22  ;;  %v47_v33 = vshll.u32 %v565_v31, %v38_v22 }
  0x91   :  { %v50_v36 = vshll.u32 %v566_v34, %v38_v22  ;;  %v53_v39 = vshll.u32 %v567_v37, %v38_v22  ;;  %vm56_vm1 = vcmp.lt.s32.totalorder %v37_v25, 1  ;;  %vm59_vm2 = vcmp.lt.s32.totalorder %v37_v25, 4 }
  0x92   :  { %v42_v30 = vshrl.u32 %v564_v28, %v39_v24  ;;  %v45_v32 = vshrl.u32 %v565_v31, %v39_v24  ;;  %v48_v35 = vshrl.u32 %v566_v34, %v39_v24  ;;  %v51_v38 = vshrl.u32 %v567_v37, %v39_v24 }
  0x93   :  { %v54_v41 = vshrl.u32 %v568_v40, %v39_v24  ;;  %v40_v51 = vshrl.u32 %v563_v26, %v39_v24  ;;  %vm58_vm3 = vcmp.lt.s32.totalorder %v37_v25, 3  ;;  %vm57_vm4 = vcmp.lt.s32.totalorder %v37_v25, 2 }
  0x94   :  { %v43_v43 = vor.u32 %v42_v30, %v41_v27  ;;  %v46_v44 = vor.u32 %v45_v32, %v44_v29  ;;  %v49_v45 = vor.u32 %v48_v35, %v47_v33  ;;  %v52_v46 = vor.u32 %v51_v38, %v50_v36 }
  0x95   :  { %v55_v47 = vor.u32 %v54_v41, %v53_v39  ;;  %v570_v39 = vmov 0.0  }
  0x96   :  { %v61_v48 = vsel %vm59_vm2, %v49_v45, 2102212464  ;;  %v64_v49 = vsel %vm56_vm1, %v43_v43, %v46_v44  ;;  %v68_v50 = vsel %vm56_vm1, %v46_v44, %v49_v45  ;;  %v65_v52 = vsel %vm59_vm2, %v52_v46, 920167782  ;;  %468 = vmatprep.mubr.msk.f32.mxu0 %vm569_vm9, %v570_v39  ;;  %487 = vmatprep.mubr.msk.f32.mxu1 %vm569_vm9, %v570_v39 }
  0x97   :  { %v69_v53 = vsel %vm59_vm2, %v55_v47, 1326507024  ;;  %v66_v54 = vsel %vm58_vm3, %v49_v45, %v65_v52  ;;  %v60_v57 = vsel %vm56_vm1, %v40_v51, %v43_v43  ;;  %v62_v58 = vsel %vm58_vm3, %v46_v44, %v61_v48 }
  0x98   :  { %v70_v55 = vsel %vm58_vm3, %v52_v46, %v69_v53  ;;  %v67_v59 = vsel %vm57_vm4, %v64_v49, %v66_v54  ;;  %v63_v1 = vsel %vm57_vm4, %v60_v57, %v62_v58  ;;  %vm235_vm1 = vcmask 130048   ;;  %v328_v57 = vld [vmem:[%s682_s1 + $0x30] sm:$0xff]  ;;  %v329_v58 = vld [vmem:[%s682_s1 + $0x38] sm:$0xff] }
  0x99   :  { %v71_v60 = vsel %vm57_vm4, %v68_v50, %v70_v55  ;;  %v624_v63 = vmul.u32.u64.low %v72_v56, %v67_v59  ;;  %v625_v0 = vmul.u32.u64.high %v72_v56, %v67_v59, %v624_v63  ;;  %v79_v3 = vmul.u32 %v72_v56, %v63_v1  ;;  %v326_v55 = vld [vmem:[%s682_s1 + $0x20] sm:$0xff] }
  0x9a   :  { %v621_v61 = vmul.u32.u64.low %v72_v56, %v71_v60  ;;  %v622_v62 = vmul.u32.u64.high %v72_v56, %v71_v60, %v621_v61  ;;  %vm245_vm2 = vcmask 261120   ;;  %v327_v56 = vld [vmem:[%s682_s1 + $0x28] sm:$0xff]  ;;  %v500_v59 = vpack.c.bf16 %v329_v58, %v328_v57  ;;  %v330_v60 = vld [vmem:[%s682_s1 + $0x40] sm:$0xff] }
  0x9b   :  { %v82_v2 = vadd.s32 1, %v625_v0  ;;  %v331_v61 = vld [vmem:[%s682_s1 + $0x48] sm:$0xff]  ;;  %vm338_vm3 = vcmask 523264  }
  0x9c   :  { %vm81_vm5 = vc.u32 %v622_v62, %v624_v63  ;;  %v80_v19 = vadd.s32 %v624_v63, %v622_v62  ;;  %v503_v62 = vpack.c.bf16 %v331_v61, %v330_v60  ;;  %v332_v63 = vld [vmem:[%s682_s1 + $0x50] sm:$0xff] }
  0x9d   :  { %v83_v4 = vsel %vm81_vm5, %v82_v2, %v625_v0  ;;  %v333_v0 = vld [vmem:[%s682_s1 + $0x58] sm:$0xff]  ;;  %v243_v2 = vsub.s32 0, %v606_v10  ;;  %s572_s1 = smov [#allocation2]  }
  0x9e   :  { %v84_v6 = vadd.s32 %v83_v4, %v79_v3  ;;  %v506_v1 = vpack.c.bf16 %v333_v0, %v332_v63  ;;  %s426_s9 = sshll.u32 %s572_s1, 4  ;;  %s427_s9 = int_to_ptr.vmem [resolvable:$true] %s426_s9 }
  0x9f   :  { %v244_v3 = vrot.slane %v612_v12, %v243_v2  ;;  %s537_s10 = scalar_lea.vmem %s427_s9, 128  ;;  %p542_p1 = scmp.lt.s32.totalorder %s427_s9, %s427_s9 }
  0xa0   :  { %v85_v7 = vadd.s32 536870912, %v84_v6  ;;  %p538_p0 = scmp.ne.s32.totalorder %s427_s9, %s537_s10  ;;  %p543_p2 = scmp.lt.s32.totalorder %s537_s10, %s537_s10 }
  0xa2   :  { %v86_v8 = vshrl.u32 %v85_v7, 30  ;;  %p544_p3 = por %p543_p2, %p542_p1 }
  0xa4   :  { %v87_v9 = vshll.u32 %v86_v8, 30  ;;  %v110_v32 = vsub.s32 4, %v86_v8  ;;  %p545_p4 = pnand %p544_p3, %p538_p0 }
  0xa6   :  { %v88_v11 = vsub.s32 %v84_v6, %v87_v9  ;;  %v111_v35 = vsel %vm26_vm7, %v110_v32, %v86_v8 }
  0xa7   :  { %v113_v37 = vsel %vm25_vm8, 0, %v111_v35 }
  0xa8   :  { %v90_v13 = vsub.s32 0, %v88_v11  ;;  %v117_v38 = vadd.s32 3, %v113_v37  ;;  %v221_v41 = vand.u32 3, %v113_v37 }
  0xaa   :  { %v435_v14 = vmin.u32 %v90_v13, %v88_v11  ;;  %v118_v40 = vand.u32 3, %v117_v38  ;;  %vm226_vm11 = vcmp.eq.s32.totalorder %v221_v41, 2  ;;  %vm223_vm13 = vcmp.eq.s32.totalorder %v221_v41, 0 }
  0xab   :  { %vm222_vm15 = vcmp.lt.s32.totalorder %v221_v41, 2 }
  0xac   :  { %v92_v16 = vclz %v435_v14  ;;  %vm123_vm10 = vcmp.eq.s32.totalorder %v118_v40, 2  ;;  %vm120_vm12 = vcmp.eq.s32.totalorder %v118_v40, 0  ;;  %vm119_vm14 = vcmp.lt.s32.totalorder %v118_v40, 2 }
  0xad   :  { %v336_v14 = vsub.s32 1, %v606_v10 }
  0xae   :  { %v436_v17 = vadd.s32 4294967294, %v92_v16 }
  0xaf   :  { %v337_v16 = vrot.slane %v612_v12, %v336_v14 }
  0xb0   :  { %vm437_vm6 = vcmp.lt.s32.totalorder %v436_v17, 0 }
  0xb1   :  { %v95_v18 = vsel %vm437_vm6, 0, %v436_v17 }
  0xb2   :  { %v96_v21 = vsub.s32 32, %v95_v18  ;;  %v100_v22 = vsub.s32 4294967266, %v95_v18  ;;  %v97_v23 = vshll.u32 %v88_v11, %v95_v18 }
  0xb4   :  { %v98_v24 = vshrl.u32 %v80_v19, %v96_v21  ;;  %v101_v25 = vadd.s32 127, %v100_v22 }
  0xb6   :  { %v99_v26 = vor.u32 %v98_v24, %v97_v23  ;;  %v102_v27 = vshll.u32 %v101_v25, 23 }
  0xb8   :  { %v103_v28 = vor.u32 4788187, %v102_v27  ;;  %v106_v30 = vcvt.s32.f32 %v99_v26 }
  0xba   :  { %v104_v29 = vand.u32 2147483647, %v103_v28 }
  0xbc   :  { %v107_v31 = vmul.f32 %v106_v30, %v104_v29 }
  0xbe   :  { %v108_v33 = vxor.u32 2147483648, %v107_v31 }
  0xc0   :  { %v109_v34 = vsel %vm26_vm7, %v108_v33, %v107_v31 }
  0xc1   :  { %v112_v36 = vsel %vm25_vm8, %v615_v15, %v109_v34  ;;  %v497_v15 = vpack.c.bf16 %v327_v56, %v326_v55 }
  0xc2   :  { %525 = vcosq.f32 %v112_v36 }
  0xc3   :  { %527 = vsinq.f32 %v112_v36  ;;  %498 = vmatpush3.bf16.msra.mxu1 %v497_v15 }
  0xc4   :  { %499 = vmatprep.subr.bf16.mxu1 %v562_v5 }
  0xc7   :  { %501 = vmatpush3.bf16.msra.mxu1 %v500_v59 }
  0xc8   :  { %502 = vmatprep.subr.bf16.mxu1 %v562_v5 }
  0xcb   :  { %504 = vmatpush3.bf16.msra.mxu1 %v503_v62 }
  0xcc   :  { %v526_v42 = vpop.eup %525  ;;  %505 = vmatprep.subr.bf16.mxu1 %v562_v5 }
  0xcd   :  { %v528_v43 = vpop.eup %527  ;;  %v124_v44 = vxor.u32 2147483648, %v526_v42 }
  0xce   :  { %v121_v45 = vxor.u32 2147483648, %v528_v43 }
  0xcf   :  { %v228_v20 = vsel %vm226_vm11, %v124_v44, %v528_v43  ;;  %v125_v46 = vsel %vm123_vm10, %v124_v44, %v528_v43  ;;  %507 = vmatpush3.bf16.msra.mxu1 %v506_v1 }
  0xd0   :  { %v225_v47 = vsel %vm223_vm13, %v526_v42, %v121_v45  ;;  %v122_v48 = vsel %vm120_vm12, %v526_v42, %v121_v45 }
  0xd1   :  { %v229_v49 = vsel %vm222_vm15, %v225_v47, %v228_v20  ;;  %v126_v50 = vsel %vm119_vm14, %v122_v48, %v125_v46 }
  0xd2   :  { %v230_v51 = vsel %vm116_vm0, nan, %v229_v49  ;;  %v127_v52 = vsel %vm116_vm0, nan, %v126_v50 }
  0xd3   :  { %232 = vrot.lane.b32.xlu0 %v230_v51, %s571_s20 }
 0x145   :  { %v233_v53 = vpop.permute.xlu0 %232 }
 0x146   :  { %v236_v54 = vsel %vm235_vm1, %v127_v52, %v233_v53 }
 0x147   :  { %469 = vmatmul.mubr.msk.f32.vlgmr.msra.gmra.mrb[0].mxu0 %vm245_vm2, %v236_v54 }
 0x21a   :  { %v315_v4 = vpop.f32.mrb[0].mxu0 }
 0x21b   :  { %v316_v6 = vadd.f32 %v315_v4, %v244_v3  ;;  %v470_v7 = vpop.f32.mrb[1].mxu0 }
 0x21d   :  { %v443_v8 = vmul.f32 -1.442695, %v316_v6 }
 0x21f   :  { %529 = vpow2.f32 %v443_v8 }
 0x229   :  { %v530_v5 = vpop.eup %529 }
 0x22a   :  { %v322_v9 = vadd.f32 1.0, %v530_v5 }
 0x22c   :  { %531 = vrcp.f32 %v322_v9 }
 0x236   :  { %v532_v11 = vpop.eup %531 }
 0x237   :  { %v325_v13 = vmul.f32 %v532_v11, %v316_v6 }
 0x239   :  { %488 = vmatmul.mubr.msk.f32.vlgmr.msra.gmra.mrb[0].mxu1 %vm338_vm3, %v325_v13 }
 0x30c   :  { %v408_v17 = vpop.f32.mrb[0].mxu1 }
 0x30d   :  { %v409_v18 = vadd.f32 %v408_v17, %v337_v16  ;;  %v489_v19 = vpop.f32.mrb[1].mxu1 }
 0x30f   :  { %v445_v21 = vmul.f32 -1.442695, %v409_v18 }
 0x311   :  { %533 = vpow2.f32 %v445_v21 }
 0x31b   :  { %v534_v22 = vpop.eup %533 }
 0x31c   :  { %v415_v23 = vadd.f32 1.0, %v534_v22 }
 0x31e   :  { %535 = vrcp.f32 %v415_v23 }
 0x328   :  { %v536_v24 = vpop.eup %535 }
 0x329   :  { %v418_v25 = vmul.f32 %v536_v24, %v409_v18 }
 0x32b   :  { %419 = vst.msk [vmem:[#allocation2] sm:$0xff] %vm338_vm3, %v418_v25 }
 0x32c   :  { %548 = shalt.err (!%p545_p4)
}
 0x32d   :  { %s549_s13 = scalar_lea.hbm %s683_s2, 128 }
 0x32e   :  { %p550_p5 = scmp.ne.s32.totalorder %s683_s2, %s549_s13  ;;  %p553_p6 = scmp.lt.u32.totalorder %s549_s13, %s683_s2 }
 0x330   :  { %p555_p7 = pnand %p553_p6, %p550_p5 }
 0x332   :  { %558 = shalt.err (!%p555_p7)
}
 0x333   :  { %429 = dma.vmem_to_hbm [thread:$0]  %s427_s9, 128, %s683_s2, [#allocation3]  }
 0x334   :  { %559 = dma.done.wait [#allocation3], 128  }
 0x335   :  { %560 = vsyncadd [#allocation3], 4294967168 }
 0x336   :  { %433 = vsyncpa [#allocation3], 1 }

</bundles_post_ra>
